<compile_context>
chip_gen: v7x
topology: tpu7x:2x2x1
jax: 0.10.0
libtpu: 0.0.40
codegen_flags: <defaults>
</compile_context>

<pallas_src>
import functools
import math

import jax
import jax.numpy as jnp
from jax.experimental import pallas as pl
from jax.experimental.pallas import tpu as pltpu


def _round_up(x, m):
    return ((x + m - 1) // m) * m


# ----------------------------------------------------------------------------
# Kernel: 3 lane-dense matmuls on the fused/padded weights, one (B, 128) store.
# ----------------------------------------------------------------------------
def _fused_ac_kernel(n_actions, s_ref, w1_ref, b1_ref, w2_ref, b2_ref,
                     wh_ref, bh_ref, out_ref):
    s = s_ref[...]

    # Layer 1: [policy_fc1 | value_fc1] concatenated along the output lanes.
    h1 = jnp.dot(s, w1_ref[...], preferred_element_type=jnp.float32) + b1_ref[...]
    h1 = jnp.maximum(h1, 0.0)

    # Layer 2: block-diagonal [policy_fc2, value_fc2] -> branches stay independent.
    h2 = jnp.dot(h1, w2_ref[...], preferred_element_type=jnp.float32) + b2_ref[...]
    h2 = jnp.maximum(h2, 0.0)

    # Heads: columns [0:na) = mu, [na:2na) = log_sigma, [2na] = v, rest zero-pad.
    z = jnp.dot(h2, wh_ref[...], preferred_element_type=jnp.float32) + bh_ref[...]

    # tanh only on the mu lanes (mask-select keeps the op lane-dense on EUP/VPU).
    lane = jax.lax.broadcasted_iota(jnp.int32, z.shape, dimension=1)
    z = jnp.where(lane < n_actions, jnp.tanh(z), z)

    out_ref[...] = z.astype(out_ref.dtype)


# ----------------------------------------------------------------------------
# Wrapper-side packing of the original per-layer params (done once, outside
# the per-call path).
# ----------------------------------------------------------------------------
def pack_params(params, input_dims, p_fc_dims, v_fc_dims, n_actions, out_lanes=128):
    h1p, h1v = p_fc_dims[0], v_fc_dims[0]
    h2p, h2v = p_fc_dims[1], v_fc_dims[1]
    H1 = _round_up(h1p + h1v, 128)
    H2 = _round_up(h2p + h2v, 128)
    na = n_actions

    w1 = jnp.zeros((input_dims, H1), jnp.float32)
    w1 = w1.at[:, :h1p].set(params["p_fc1_w"]).at[:, h1p:h1p + h1v].set(params["v_fc1_w"])
    b1 = jnp.zeros((1, H1), jnp.float32)
    b1 = b1.at[:, :h1p].set(params["p_fc1_b"]).at[:, h1p:h1p + h1v].set(params["v_fc1_b"])

    w2 = jnp.zeros((H1, H2), jnp.float32)
    w2 = (w2.at[:h1p, :h2p].set(params["p_fc2_w"])
             .at[h1p:h1p + h1v, h2p:h2p + h2v].set(params["v_fc2_w"]))
    b2 = jnp.zeros((1, H2), jnp.float32)
    b2 = b2.at[:, :h2p].set(params["p_fc2_b"]).at[:, h2p:h2p + h2v].set(params["v_fc2_b"])

    wh = jnp.zeros((H2, out_lanes), jnp.float32)
    wh = (wh.at[:h2p, :na].set(params["mu_w"])
             .at[:h2p, na:2 * na].set(params["log_sigma_w"])
             .at[h2p:h2p + h2v, 2 * na:2 * na + 1].set(params["v_w"]))
    bh = jnp.zeros((1, out_lanes), jnp.float32)
    bh = (bh.at[:, :na].set(params["mu_b"])
             .at[:, na:2 * na].set(params["log_sigma_b"])
             .at[:, 2 * na:2 * na + 1].set(params["v_b"]))

    return (w1, b1, w2, b2, wh, bh)


def generic_network_forward(state, packed, n_actions):
    """Fused actor-critic forward in a single Pallas kernel call."""
    w1, b1, w2, b2, wh, bh = packed
    B, D = state.shape
    out_lanes = wh.shape[1]

    # Pad batch to the f32 sublane tile (8 rows).
    B_pad = _round_up(max(B, 8), 8)
    if B_pad != B:
        state = jnp.pad(state, ((0, B_pad - B), (0, 0)))

    flops = 2 * B_pad * (D * w1.shape[1] + w1.shape[1] * w2.shape[1]
                         + w2.shape[1] * out_lanes)
    bytes_accessed = 4 * (state.size + w1.size + b1.size + w2.size + b2.size
                          + wh.size + bh.size + B_pad * out_lanes)

    vmem = pl.BlockSpec(memory_space=pltpu.MemorySpace.VMEM)
    out = pl.pallas_call(
        functools.partial(_fused_ac_kernel, n_actions),
        out_shape=jax.ShapeDtypeStruct((B_pad, out_lanes), jnp.float32),
        in_specs=[vmem] * 7,
        out_specs=vmem,
        cost_estimate=pl.CostEstimate(
            flops=int(flops),
            transcendentals=int(B_pad * out_lanes),
            bytes_accessed=int(bytes_accessed),
        ),
    )(state, w1, b1, w2, b2, wh, bh)

    mu = out[:B, :n_actions]
    log_sigma = out[:B, n_actions:2 * n_actions]
    v = out[:B, 2 * n_actions:2 * n_actions + 1]
    return mu, log_sigma, v


# ----------------------------------------------------------------------------
# Parameter init (torch.nn.Linear-style) and pure-JAX reference.
# ----------------------------------------------------------------------------
def init_params(key, input_dims, p_fc_dims, v_fc_dims, n_actions):
    def linear(key, fan_in, fan_out):
        kw, kb = jax.random.split(key)
        bound = 1.0 / math.sqrt(fan_in)
        w = jax.random.uniform(kw, (fan_in, fan_out), jnp.float32, -bound, bound)
        b = jax.random.uniform(kb, (1, fan_out), jnp.float32, -bound, bound)
        return w, b

    keys = jax.random.split(key, 7)
    p1w, p1b = linear(keys[0], input_dims, p_fc_dims[0])
    v1w, v1b = linear(keys[1], input_dims, v_fc_dims[0])
    p2w, p2b = linear(keys[2], p_fc_dims[0], p_fc_dims[1])
    v2w, v2b = linear(keys[3], v_fc_dims[0], v_fc_dims[1])
    muw, mub = linear(keys[4], p_fc_dims[-1], n_actions)
    lsw, lsb = linear(keys[5], p_fc_dims[-1], n_actions)
    vw, vb = linear(keys[6], v_fc_dims[-1], 1)

    return {
        "p_fc1_w": p1w, "p_fc1_b": p1b,
        "p_fc2_w": p2w, "p_fc2_b": p2b,
        "mu_w": muw, "mu_b": mub,
        "log_sigma_w": lsw, "log_sigma_b": lsb,
        "v_fc1_w": v1w, "v_fc1_b": v1b,
        "v_fc2_w": v2w, "v_fc2_b": v2b,
        "v_w": vw, "v_b": vb,
    }


def reference_forward(state, p):
    x = jax.nn.relu(state @ p["p_fc1_w"] + p["p_fc1_b"])
    x = jax.nn.relu(x @ p["p_fc2_w"] + p["p_fc2_b"])
    mu = jnp.tanh(x @ p["mu_w"] + p["mu_b"])
    log_sigma = x @ p["log_sigma_w"] + p["log_sigma_b"]
    y = jax.nn.relu(state @ p["v_fc1_w"] + p["v_fc1_b"])
    y = jax.nn.relu(y @ p["v_fc2_w"] + p["v_fc2_b"])
    v = y @ p["v_w"] + p["v_b"]
    return mu, log_sigma, v


if __name__ == "__main__":
    batch = 4
    input_dims = 8
    p_fc_dims = [32, 32]
    v_fc_dims = [32, 32]
    n_actions = 2

    key = jax.random.PRNGKey(0)
    k_state, k_params = jax.random.split(key)
    state = jax.random.normal(k_state, (batch, input_dims), dtype=jnp.float32)
    params = init_params(k_params, input_dims, p_fc_dims, v_fc_dims, n_actions)

    packed = pack_params(params, input_dims, p_fc_dims, v_fc_dims, n_actions)
    packed = jax.block_until_ready(packed)  # one-time packing, outside the hot path

    mu, log_sigma, v = generic_network_forward(state, packed, n_actions)
    jax.block_until_ready((mu, log_sigma, v))

    mu_ref, ls_ref, v_ref = reference_forward(state, params)
    assert mu.shape == (batch, n_actions)
    assert log_sigma.shape == (batch, n_actions)
    assert v.shape == (batch, 1)
    assert jnp.allclose(mu, mu_ref, atol=1e-5, rtol=1e-5)
    assert jnp.allclose(log_sigma, ls_ref, atol=1e-5, rtol=1e-5)
    assert jnp.allclose(v, v_ref, atol=1e-5, rtol=1e-5)

    print("KERNEL_OK")
</pallas_src>

<mosaic_0001>
module attributes {stable_mosaic.version = 11 : i64} {
  func.func @_fused_ac_kernel(%arg0: memref<8x8xf32, #tpu.memory_space<vmem>>, %arg1: memref<8x128xf32, #tpu.memory_space<vmem>>, %arg2: memref<1x128xf32, #tpu.memory_space<vmem>>, %arg3: memref<128x128xf32, #tpu.memory_space<vmem>>, %arg4: memref<1x128xf32, #tpu.memory_space<vmem>>, %arg5: memref<128x128xf32, #tpu.memory_space<vmem>>, %arg6: memref<1x128xf32, #tpu.memory_space<vmem>>, %arg7: memref<8x128xf32, #tpu.memory_space<vmem>>) attributes {dimension_semantics = [], scalar_prefetch = 0 : i64, scratch_operands = 0 : i64, tpu.core_type = #tpu.core_type<tc>} {
    %c0 = arith.constant 0 : index
    %c0_0 = arith.constant 0 : index
    %0 = vector.load %arg0[%c0, %c0_0] : memref<8x8xf32, #tpu.memory_space<vmem>>, vector<8x8xf32>
    %c0_1 = arith.constant 0 : index
    %c0_2 = arith.constant 0 : index
    %1 = vector.load %arg1[%c0_1, %c0_2] : memref<8x128xf32, #tpu.memory_space<vmem>>, vector<8x128xf32>
    %cst = arith.constant dense<0.000000e+00> : vector<8x128xf32>
    %2 = tpu.matmul %0, %1, %cst {dimension_numbers = #tpu.dot_dimension_numbers<[1], [0], [0], [1], [0, 0, 1, 1], [], []>} : vector<8x8xf32>, vector<8x128xf32>, vector<8x128xf32> -> vector<8x128xf32>
    %c0_3 = arith.constant 0 : index
    %c0_4 = arith.constant 0 : index
    %3 = vector.load %arg2[%c0_3, %c0_4] : memref<1x128xf32, #tpu.memory_space<vmem>>, vector<1x128xf32>
    %4 = vector.broadcast %3 : vector<1x128xf32> to vector<8x128xf32>
    %5 = arith.addf %2, %4 : vector<8x128xf32>
    %cst_5 = arith.constant 0.000000e+00 : f32
    %6 = vector.broadcast %cst_5 : f32 to vector<8x128xf32>
    %7 = arith.maximumf %5, %6 : vector<8x128xf32>
    %c0_6 = arith.constant 0 : index
    %c0_7 = arith.constant 0 : index
    %8 = vector.load %arg3[%c0_6, %c0_7] : memref<128x128xf32, #tpu.memory_space<vmem>>, vector<128x128xf32>
    %cst_8 = arith.constant dense<0.000000e+00> : vector<8x128xf32>
    %9 = tpu.matmul %7, %8, %cst_8 {dimension_numbers = #tpu.dot_dimension_numbers<[1], [0], [0], [1], [0, 0, 1, 1], [], []>} : vector<8x128xf32>, vector<128x128xf32>, vector<8x128xf32> -> vector<8x128xf32>
    %c0_9 = arith.constant 0 : index
    %c0_10 = arith.constant 0 : index
    %10 = vector.load %arg4[%c0_9, %c0_10] : memref<1x128xf32, #tpu.memory_space<vmem>>, vector<1x128xf32>
    %11 = vector.broadcast %10 : vector<1x128xf32> to vector<8x128xf32>
    %12 = arith.addf %9, %11 : vector<8x128xf32>
    %cst_11 = arith.constant 0.000000e+00 : f32
    %13 = vector.broadcast %cst_11 : f32 to vector<8x128xf32>
    %14 = arith.maximumf %12, %13 : vector<8x128xf32>
    %c0_12 = arith.constant 0 : index
    %c0_13 = arith.constant 0 : index
    %15 = vector.load %arg5[%c0_12, %c0_13] : memref<128x128xf32, #tpu.memory_space<vmem>>, vector<128x128xf32>
    %cst_14 = arith.constant dense<0.000000e+00> : vector<8x128xf32>
    %16 = tpu.matmul %14, %15, %cst_14 {dimension_numbers = #tpu.dot_dimension_numbers<[1], [0], [0], [1], [0, 0, 1, 1], [], []>} : vector<8x128xf32>, vector<128x128xf32>, vector<8x128xf32> -> vector<8x128xf32>
    %c0_15 = arith.constant 0 : index
    %c0_16 = arith.constant 0 : index
    %17 = vector.load %arg6[%c0_15, %c0_16] : memref<1x128xf32, #tpu.memory_space<vmem>>, vector<1x128xf32>
    %18 = vector.broadcast %17 : vector<1x128xf32> to vector<8x128xf32>
    %19 = arith.addf %16, %18 : vector<8x128xf32>
    %20 = tpu.iota {dimensions = array<i32: 1>} : vector<8x128xi32>
    %c2_i32 = arith.constant 2 : i32
    %21 = vector.broadcast %c2_i32 : i32 to vector<8x128xi32>
    %22 = arith.cmpi slt, %20, %21 : vector<8x128xi32>
    %23 = math.tanh %19 : vector<8x128xf32>
    %24 = arith.select %22, %23, %19 : vector<8x128xi1>, vector<8x128xf32>
    %c0_17 = arith.constant 0 : index
    %c0_18 = arith.constant 0 : index
    %25 = vector.load %arg7[%c0_17, %c0_18] : memref<8x128xf32, #tpu.memory_space<vmem>>, vector<8x128xf32>
    tpu.vector_store %arg7[%c0_17, %c0_18], %24 {strides = array<i32>} : memref<8x128xf32, #tpu.memory_space<vmem>>, vector<8x128xf32>,
    return
  }
}

</mosaic_0001>

<bundles_post_ra>
// kernel: tpu_custom_call.1
= control target key start
LH: loop header
LB: loop body
LE: loop exit
PB: predicated region body
PF: predicated region fallthrough
CT: control target
= control target key end

     0   :  { %12 = vsyncpa [#allocation3], 0  ;;  %s803_s0 = inlined_call_operand.hbm [shape: f32[8,8], index: 0, kind: input, shape index: {}]   ;;  %s804_s1 = inlined_call_operand.hbm [shape: f32[8,128], index: 1, kind: input, shape index: {}]   ;;  %s805_s2 = inlined_call_operand.vmem [shape: f32[1,128], index: 2, kind: input, shape index: {}]   ;;  %s806_s3 = inlined_call_operand.hbm [shape: f32[128,128], index: 3, kind: input, shape index: {}]   ;;  %s807_s4 = inlined_call_operand.vmem [shape: f32[1,128], index: 4, kind: input, shape index: {}]   ;;  %s808_s5 = inlined_call_operand.hbm [shape: f32[128,128], index: 5, kind: input, shape index: {}]   ;;  %s809_s6 = inlined_call_operand.vmem [shape: f32[1,128], index: 6, kind: input, shape index: {}]   ;;  %s810_s7 = inlined_call_operand.hbm [shape: f32[8,128], index: 7, kind: output, shape index: {}]  }
   0x1   :  { %13 = vsyncpa [#allocation6], 0 }
   0x2   :  { %14 = vsyncpa [#allocation9], 0 }
   0x3   :  { %15 = vsyncpa [#allocation4], 0  ;;  %s665_s24 = smov [#allocation5]   ;;  %s666_s26 = smov [#allocation2]  }
   0x4   :  { %s32_s25 = sshll.u32 %s665_s24, 4  ;;  %s22_s27 = sshll.u32 %s666_s26, 4  ;;  %s33_s25 = int_to_ptr.vmem [resolvable:$true] %s32_s25  ;;  %s23_s27 = int_to_ptr.vmem [resolvable:$true] %s22_s27 }
   0x5   :  { %s547_s30 = scalar_lea.hbm %s804_s1, 128 }
   0x6   :  { %p548_p0 = scmp.ne.s32.totalorder %s804_s1, %s547_s30  ;;  %p551_p1 = scmp.lt.u32.totalorder %s547_s30, %s804_s1 }
   0x8   :  { %p553_p2 = pnand %p551_p1, %p548_p0 }
   0xa   :  { %556 = shalt.err (!%p553_p2)
}
   0xb   :  { %s557_s12 = scalar_lea.vmem %s33_s25, 128  ;;  %p562_p4 = scmp.lt.s32.totalorder %s33_s25, %s33_s25 }
   0xc   :  { %p558_p3 = scmp.ne.s32.totalorder %s33_s25, %s557_s12  ;;  %p563_p5 = scmp.lt.s32.totalorder %s557_s12, %s557_s12 }
   0xe   :  { %p564_p6 = por %p563_p5, %p562_p4 }
  0x10   :  { %p565_p7 = pnand %p564_p6, %p558_p3 }
  0x12   :  { %568 = shalt.err (!%p565_p7)
}
  0x13   :  { %35 = dma.hbm_to_vmem [thread:$0]  %s804_s1, 128, %s33_s25, [#allocation6]  }
  0x14   :  { %s569_s17 = scalar_lea.hbm %s803_s0, 128 }
  0x15   :  { %p570_p8 = scmp.ne.s32.totalorder %s803_s0, %s569_s17  ;;  %p573_p9 = scmp.lt.u32.totalorder %s569_s17, %s803_s0 }
  0x17   :  { %p575_p10 = pnand %p573_p9, %p570_p8 }
  0x19   :  { %578 = shalt.err (!%p575_p10)
}
  0x1a   :  { %s579_s22 = scalar_lea.vmem %s23_s27, 128  ;;  %p584_p12 = scmp.lt.s32.totalorder %s23_s27, %s23_s27 }
  0x1b   :  { %p580_p11 = scmp.ne.s32.totalorder %s23_s27, %s579_s22  ;;  %p585_p13 = scmp.lt.s32.totalorder %s579_s22, %s579_s22 }
  0x1d   :  { %p586_p0 = por %p585_p13, %p584_p12 }
  0x1f   :  { %p587_p1 = pnand %p586_p0, %p580_p11 }
  0x21   :  { %590 = shalt.err (!%p587_p1)
}
  0x22   :  { %25 = dma.hbm_to_vmem [thread:$0]  %s803_s0, 128, %s23_s27, [#allocation3]  }
  0x23   :  { %s667_s24 = smov [#allocation7]   ;;  %s591_s29 = scalar_lea.hbm %s806_s3, 2048 }
  0x24   :  { %s43_s25 = sshll.u32 %s667_s24, 4  ;;  %p592_p2 = scmp.ne.s32.totalorder %s806_s3, %s591_s29  ;;  %s44_s25 = int_to_ptr.vmem [resolvable:$true] %s43_s25 }
  0x25   :  { %p595_p3 = scmp.lt.u32.totalorder %s591_s29, %s806_s3 }
  0x27   :  { %p597_p4 = pnand %p595_p3, %p592_p2 }
  0x29   :  { %600 = shalt.err (!%p597_p4)
}
  0x2a   :  { %s601_s11 = scalar_lea.vmem %s44_s25, 2048  ;;  %p606_p6 = scmp.lt.s32.totalorder %s44_s25, %s44_s25 }
  0x2b   :  { %p602_p5 = scmp.ne.s32.totalorder %s44_s25, %s601_s11  ;;  %p607_p7 = scmp.lt.s32.totalorder %s601_s11, %s601_s11 }
  0x2d   :  { %p608_p8 = por %p607_p7, %p606_p6 }
  0x2f   :  { %p609_p9 = pnand %p608_p8, %p602_p5 }
  0x31   :  { %612 = shalt.err (!%p609_p9)
}
  0x32   :  { %s668_s0 = smov 128   ;;  %s669_s27 = smov 8  }
  0x33   :  { %49 = dma.hbm_to_vmem [thread:$0]  %s806_s3, 2048, %s44_s25, [#allocation6], %s668_s0, %s668_s0, %s669_s27  }
  0x34   :  { %s670_s14 = smov [#allocation8]   ;;  %s613_s18 = scalar_lea.hbm %s808_s5, 2048 }
  0x35   :  { %s57_s15 = sshll.u32 %s670_s14, 4  ;;  %p614_p10 = scmp.ne.s32.totalorder %s808_s5, %s613_s18  ;;  %s58_s15 = int_to_ptr.vmem [resolvable:$true] %s57_s15 }
  0x36   :  { %p617_p11 = scmp.lt.u32.totalorder %s613_s18, %s808_s5 }
  0x38   :  { %p619_p12 = pnand %p617_p11, %p614_p10 }
  0x3a   :  { %622 = shalt.err (!%p619_p12)
}
  0x3b   :  { %s623_s1 = scalar_lea.vmem %s58_s15, 2048  ;;  %p628_p0 = scmp.lt.s32.totalorder %s58_s15, %s58_s15 }
  0x3c   :  { %p624_p13 = scmp.ne.s32.totalorder %s58_s15, %s623_s1  ;;  %p629_p1 = scmp.lt.s32.totalorder %s623_s1, %s623_s1 }
  0x3e   :  { %p630_p2 = por %p629_p1, %p628_p0 }
  0x40   :  { %p631_p3 = pnand %p630_p2, %p624_p13 }
  0x42   :  { %634 = shalt.err (!%p631_p3)
}
  0x43   :  { %63 = dma.hbm_to_vmem [thread:$0]  %s808_s5, 2048, %s58_s15, [#allocation9], %s668_s0, %s668_s0, %s669_s27  }
  0x44   :  { %657 = dma.done.wait [#allocation3], 128  }
  0x45   :  { %658 = vsyncadd [#allocation3], 4294967168 }
  0x46   :  { %659 = dma.done.wait [#allocation6], 2176  }
  0x47   :  { %660 = vsyncadd [#allocation6], 4294965120 }
  0x48   :  { %661 = dma.done.wait [#allocation9], 2048  }
  0x49   :  { %662 = vsyncadd [#allocation9], 4294965248  ;;  %v671_v0 = vmov 0.0   ;;  %vm672_vm0 = vmmov 0   ;;  %v673_v1 = vmov 0.0|0.0   ;;  %vm87_vm1 = vcmask 64512  }
  0x4a   :  { %412 = vmatprep.subr.mxu0 %v671_v0  ;;  %414 = vmatprep.mubr.msk.f32.mxu0 %vm672_vm0, %v671_v0  ;;  %v79_v2 = vld [vmem:[#allocation5] sm:$0xff]  ;;  %v78_v3 = vld [vmem:[#allocation2] sm:$0xff]  ;;  %v162_v4 = vld [vmem:[#allocation7] sm:$0xff]  ;;  %s674_s29 = smov [#allocation10]  }
  0x4b   :  { %487 = vmatprep.subr.bf16.mxu1 %v673_v1  ;;  %449 = vmatprep.mubr.msk.f32.mxu1 %vm672_vm0, %v671_v0  ;;  %v163_v5 = vld [vmem:[#allocation7 + $0x8] sm:$0xff]  ;;  %v164_v6 = vld [vmem:[#allocation7 + $0x10] sm:$0xff]  ;;  %v165_v7 = vld [vmem:[#allocation7 + $0x18] sm:$0xff]  ;;  %s361_s30 = sshll.u32 %s674_s29, 4  ;;  %s362_s30 = int_to_ptr.vmem [resolvable:$true] %s361_s30 }
  0x4c   :  { %413 = vmatpush3.msra.mxu0 %v79_v2  ;;  %v488_v8 = vpack.c.bf16 %v163_v5, %v162_v4  ;;  %v491_v9 = vpack.c.bf16 %v165_v7, %v164_v6  ;;  %v166_v10 = vld [vmem:[#allocation7 + $0x20] sm:$0xff]  ;;  %v167_v11 = vld [vmem:[#allocation7 + $0x28] sm:$0xff]  ;;  %v168_v13 = vld [vmem:[#allocation7 + $0x30] sm:$0xff]  ;;  %v349_v2 = vlaneseq  ;;  %p640_p5 = scmp.lt.s32.totalorder %s362_s30, %s362_s30 }
  0x4d   :  { %415 = vmatmul.mubr.msk.f32.vlgmr.msra.gmra.mrb[0].mxu0 %vm87_vm1, %v78_v3  ;;  %511 = vmatprep.subr.bf16.mxu0 %v673_v1  ;;  %v494_v12 = vpack.c.bf16 %v167_v11, %v166_v10  ;;  %v169_v14 = vld [vmem:[#allocation7 + $0x38] sm:$0xff]  ;;  %v170_v16 = vld [vmem:[#allocation7 + $0x40] sm:$0xff]  ;;  %v171_v17 = vld [vmem:[#allocation7 + $0x48] sm:$0xff] }
  0x4e   :  { %484 = vmatprep.mubr.msk.f32.mxu0 %vm672_vm0, %v671_v0  ;;  %489 = vmatpush3.bf16.msra.mxu1 %v488_v8  ;;  %v497_v15 = vpack.c.bf16 %v169_v14, %v168_v13  ;;  %v500_v18 = vpack.c.bf16 %v171_v17, %v170_v16  ;;  %v172_v19 = vld [vmem:[#allocation7 + $0x50] sm:$0xff]  ;;  %v173_v20 = vld [vmem:[#allocation7 + $0x58] sm:$0xff]  ;;  %v174_v22 = vld [vmem:[#allocation7 + $0x60] sm:$0xff]  ;;  %v350_v3 = vand.u32 127, %v349_v2 }
  0x4f   :  { %490 = vmatprep.subr.bf16.mxu1 %v673_v1  ;;  %v503_v21 = vpack.c.bf16 %v173_v20, %v172_v19  ;;  %v175_v23 = vld [vmem:[#allocation7 + $0x68] sm:$0xff]  ;;  %v176_v25 = vld [vmem:[#allocation7 + $0x70] sm:$0xff]  ;;  %v177_v26 = vld [vmem:[#allocation7 + $0x78] sm:$0xff] }
  0x50   :  { %v506_v24 = vpack.c.bf16 %v175_v23, %v174_v22  ;;  %v509_v27 = vpack.c.bf16 %v177_v26, %v176_v25  ;;  %v256_v28 = vld [vmem:[#allocation8] sm:$0xff]  ;;  %v257_v29 = vld [vmem:[#allocation8 + $0x8] sm:$0xff]  ;;  %v258_v30 = vld [vmem:[#allocation8 + $0x10] sm:$0xff]  ;;  %vm351_vm2 = vcmp.lt.s32.totalorder %v350_v3, 2 }
  0x51   :  { %v512_v31 = vpack.c.bf16 %v257_v29, %v256_v28  ;;  %v259_v32 = vld [vmem:[#allocation8 + $0x18] sm:$0xff]  ;;  %v260_v34 = vld [vmem:[#allocation8 + $0x20] sm:$0xff]  ;;  %v261_v35 = vld [vmem:[#allocation8 + $0x28] sm:$0xff] }
  0x52   :  { %492 = vmatpush3.bf16.msra.mxu1 %v491_v9  ;;  %v515_v33 = vpack.c.bf16 %v259_v32, %v258_v30  ;;  %v518_v36 = vpack.c.bf16 %v261_v35, %v260_v34  ;;  %v262_v37 = vld [vmem:[#allocation8 + $0x30] sm:$0xff]  ;;  %v263_v38 = vld [vmem:[#allocation8 + $0x38] sm:$0xff]  ;;  %v264_v40 = vld [vmem:[#allocation8 + $0x40] sm:$0xff] }
  0x53   :  { %493 = vmatprep.subr.bf16.mxu1 %v673_v1  ;;  %513 = vmatpush3.bf16.msra.mxu0 %v512_v31  ;;  %v521_v39 = vpack.c.bf16 %v263_v38, %v262_v37  ;;  %v265_v41 = vld [vmem:[#allocation8 + $0x48] sm:$0xff]  ;;  %v266_v43 = vld [vmem:[#allocation8 + $0x50] sm:$0xff]  ;;  %v267_v44 = vld [vmem:[#allocation8 + $0x58] sm:$0xff] }
  0x54   :  { %514 = vmatprep.subr.bf16.mxu0 %v673_v1  ;;  %v524_v42 = vpack.c.bf16 %v265_v41, %v264_v40  ;;  %v527_v45 = vpack.c.bf16 %v267_v44, %v266_v43  ;;  %v268_v46 = vld [vmem:[#allocation8 + $0x60] sm:$0xff]  ;;  %v269_v47 = vld [vmem:[#allocation8 + $0x68] sm:$0xff]  ;;  %v372_v49 = vld [vmem:[%s805_s2] ss:$0 sm:$0xff] }
  0x55   :  { %v530_v48 = vpack.c.bf16 %v269_v47, %v268_v46  ;;  %v270_v54 = vld [vmem:[#allocation8 + $0x70] sm:$0xff]  ;;  %v271_v55 = vld [vmem:[#allocation8 + $0x78] sm:$0xff] }
  0x56   :  { %495 = vmatpush3.bf16.msra.mxu1 %v494_v12  ;;  %v533_v56 = vpack.c.bf16 %v271_v55, %v270_v54  ;;  %v374_v57 = vld [vmem:[%s807_s4] ss:$0 sm:$0xff]  ;;  %s635_s4 = scalar_lea.vmem %s362_s30, 128 }
  0x57   :  { %496 = vmatprep.subr.bf16.mxu1 %v673_v1  ;;  %516 = vmatpush3.bf16.msra.mxu0 %v515_v33  ;;  %v375_v62 = vld [vmem:[%s809_s6] ss:$0 sm:$0xff]  ;;  %p636_p4 = scmp.ne.s32.totalorder %s362_s30, %s635_s4  ;;  %p641_p6 = scmp.lt.s32.totalorder %s635_s4, %s635_s4 }
  0x58   :  { %517 = vmatprep.subr.bf16.mxu0 %v673_v1 }
  0x59   :  { %p642_p7 = por %p641_p6, %p640_p5 }
  0x5a   :  { %498 = vmatpush3.bf16.msra.mxu1 %v497_v15 }
  0x5b   :  { %499 = vmatprep.subr.bf16.mxu1 %v673_v1  ;;  %519 = vmatpush3.bf16.msra.mxu0 %v518_v36  ;;  %p643_p8 = pnand %p642_p7, %p636_p4 }
  0x5c   :  { %520 = vmatprep.subr.bf16.mxu0 %v673_v1 }
  0x5e   :  { %501 = vmatpush3.bf16.msra.mxu1 %v500_v18 }
  0x5f   :  { %502 = vmatprep.subr.bf16.mxu1 %v673_v1  ;;  %522 = vmatpush3.bf16.msra.mxu0 %v521_v39 }
  0x60   :  { %523 = vmatprep.subr.bf16.mxu0 %v673_v1 }
  0x62   :  { %504 = vmatpush3.bf16.msra.mxu1 %v503_v21 }
  0x63   :  { %505 = vmatprep.subr.bf16.mxu1 %v673_v1  ;;  %525 = vmatpush3.bf16.msra.mxu0 %v524_v42 }
  0x64   :  { %526 = vmatprep.subr.bf16.mxu0 %v673_v1 }
  0x66   :  { %507 = vmatpush3.bf16.msra.mxu1 %v506_v24 }
  0x67   :  { %508 = vmatprep.subr.bf16.mxu1 %v673_v1  ;;  %528 = vmatpush3.bf16.msra.mxu0 %v527_v45 }
  0x68   :  { %529 = vmatprep.subr.bf16.mxu0 %v673_v1 }
  0x6a   :  { %510 = vmatpush3.bf16.msra.mxu1 %v509_v27 }
  0x6b   :  { %531 = vmatpush3.bf16.msra.mxu0 %v530_v48 }
  0x6c   :  { %532 = vmatprep.subr.bf16.mxu0 %v673_v1 }
  0x6f   :  { %534 = vmatpush3.bf16.msra.mxu0 %v533_v56 }
 0x120   :  { %v157_v50 = vpop.f32.mrb[0].mxu0 }
 0x121   :  { %v158_v51 = vadd.f32 %v372_v49, %v157_v50  ;;  %v416_v52 = vpop.f32.mrb[1].mxu0 }
 0x123   :  { %v161_v53 = vmax.f32 %v158_v51, 0.0 }
 0x125   :  { %450 = vmatmul.mubr.f32.vlgmr.msra.gmra.mrb[0].mxu1 %v161_v53 }
 0x1f8   :  { %v251_v58 = vpop.f32.mrb[0].mxu1 }
 0x1f9   :  { %v252_v59 = vadd.f32 %v374_v57, %v251_v58  ;;  %v451_v60 = vpop.f32.mrb[1].mxu1 }
 0x1fb   :  { %v255_v61 = vmax.f32 %v252_v59, 0.0 }
 0x1fd   :  { %485 = vmatmul.mubr.f32.vlgmr.msra.gmra.mrb[2].mxu0 %v255_v61 }
 0x2d0   :  { %v345_v63 = vpop.f32.mrb[2].mxu0 }
 0x2d1   :  { %v346_v0 = vadd.f32 %v375_v62, %v345_v63  ;;  %v486_v1 = vpop.f32.mrb[3].mxu0 }
 0x2d3   :  { %545 = vtanh.f32 %v346_v0 }
 0x2dd   :  { %v546_v4 = vpop.eup %545 }
 0x2de   :  { %v353_v5 = vsel %vm351_vm2, %v546_v4, %v346_v0 }
 0x2df   :  { %354 = vst [vmem:[#allocation10] sm:$0xff] %v353_v5 }
 0x2e0   :  { %646 = shalt.err (!%p643_p8)
}
 0x2e1   :  { %s647_s9 = scalar_lea.hbm %s810_s7, 128 }
 0x2e2   :  { %p648_p9 = scmp.ne.s32.totalorder %s810_s7, %s647_s9  ;;  %p651_p10 = scmp.lt.u32.totalorder %s647_s9, %s810_s7 }
 0x2e4   :  { %p653_p11 = pnand %p651_p10, %p648_p9 }
 0x2e6   :  { %656 = shalt.err (!%p653_p11)
}
 0x2e7   :  { %364 = dma.vmem_to_hbm [thread:$0]  %s362_s30, 128, %s810_s7, [#allocation4]  }
 0x2e8   :  { %663 = dma.done.wait [#allocation4], 128  }
 0x2e9   :  { %664 = vsyncadd [#allocation4], 4294967168 }
 0x2ea   :  { %368 = vsyncpa [#allocation3], 1 }
 0x2eb   :  { %369 = vsyncpa [#allocation6], 1 }
 0x2ec   :  { %370 = vsyncpa [#allocation9], 1 }
 0x2ed   :  { %371 = vsyncpa [#allocation4], 1 }

</bundles_post_ra>
